<compile_context>
chip_gen: v7x
topology: tpu7x:2x2x1
jax: 0.10.0
libtpu: 0.0.40
codegen_flags: <defaults>
</compile_context>

<pallas_src>
import functools

import jax
import jax.numpy as jnp
from jax.experimental import pallas as pl
from jax.experimental.pallas import tpu as pltpu

LEAKY_SLOPE = 0.01   # nn.LeakyReLU default
BN_EPS = 1e-5        # nn.BatchNorm2d default


# --------------------------------------------------------------------------- #
# Kernels
# --------------------------------------------------------------------------- #
def _conv1_kernel(x_ref, w_ref, b_ref, z_ref, s_ref, q_ref, *, taps, pad):
    """conv(size x 1, along H) + bias + LeakyReLU + BN1 partial stats.

    x_ref: (B, H, W*Cin)  f32   B images per grid step, lanes = flattened (w,cin)
    w_ref: (K, W*Cin, W*Cout) bf16   per-tap kron(I_W, w1[k])
    b_ref: (1, W*Cout) f32
    z_ref: (B, H, W*Cout) bf16  LeakyReLU(conv) output (pre-BN1)
    s_ref, q_ref: (1, W*Cout) f32  running (w,cout) sum / sum-of-squares,
        accumulated across ALL grid steps (block index is constant).
    """
    b, h, wc_in = x_ref.shape
    x = x_ref[...]
    if pad > 0:                                      # zero halo built in VMEM
        zp = jnp.zeros((b, pad, wc_in), x.dtype)
        xp = jnp.concatenate([zp, x, zp], axis=1)    # (B, H + 2*pad, W*Cin)
    else:
        xp = x
    xp = xp.astype(jnp.bfloat16)                     # bf16 MXU operands

    wc_out = z_ref.shape[2]
    acc = jnp.zeros((b * h, wc_out), jnp.float32)
    for k in range(taps):                            # K accumulating dots, no K-fold LHS copy
        xk = xp[:, k:k + h, :].reshape(b * h, wc_in)
        acc = acc + jnp.dot(xk, w_ref[k], preferred_element_type=jnp.float32)
    acc = acc + b_ref[...]
    z = jnp.maximum(acc, LEAKY_SLOPE * acc)          # LeakyReLU (single VALU op)
    z_ref[...] = z.reshape(b, h, wc_out).astype(z_ref.dtype)

    @pl.when(pl.program_id(0) == 0)
    def _():
        s_ref[...] = jnp.zeros_like(s_ref)
        q_ref[...] = jnp.zeros_like(q_ref)
    s_ref[...] += jnp.sum(z, axis=0, keepdims=True)
    q_ref[...] += jnp.sum(z * z, axis=0, keepdims=True)


def _conv2_kernel(z1_ref, sc_ref, sh_ref, w_ref, b_ref, z2_ref, s_ref, q_ref):
    """Fused BN1 affine + conv(1 x size, along W) + bias + LeakyReLU + stats.

    z1_ref: (TR, W*C) bf16   pre-BN1 activations (rows = flattened (n, h))
    sc/sh : (1, W*C)  f32    BN1 scale / shift tiled onto the (w, c) lane axis
    w_ref : (W*C, W*Cout) bf16  banded matrix encoding all taps of the 1 x size conv
    """
    y = z1_ref[...].astype(jnp.float32) * sc_ref[...] + sh_ref[...]   # BN1 in f32
    acc = jnp.dot(y.astype(jnp.bfloat16), w_ref[...],
                  preferred_element_type=jnp.float32) + b_ref[...]
    z = jnp.maximum(acc, LEAKY_SLOPE * acc)
    z2_ref[...] = z.astype(z2_ref.dtype)

    @pl.when(pl.program_id(0) == 0)
    def _():
        s_ref[...] = jnp.zeros_like(s_ref)
        q_ref[...] = jnp.zeros_like(q_ref)
    s_ref[...] += jnp.sum(z, axis=0, keepdims=True)
    q_ref[...] += jnp.sum(z * z, axis=0, keepdims=True)


def _bn_apply_kernel(z_ref, sc_ref, sh_ref, o_ref):
    """Final BN2 affine: lane-dense elementwise pass (bf16 in, f32 out)."""
    o_ref[...] = (z_ref[...].astype(jnp.float32) * sc_ref[...]
                  + sh_ref[...]).astype(o_ref.dtype)
    # TODO(synk): input_output_aliases would drop the extra HBM buffer, but z2
    # is bf16 and the public output f32, so the dtypes cannot alias.


# --------------------------------------------------------------------------- #
# Host-side helpers (plain JAX glue, all tiny)
# --------------------------------------------------------------------------- #
def _vmem_caps():
    """(tile-budget bytes, scoped vmem_limit_bytes) derived from the chip."""
    try:
        info = pltpu.get_tpu_info()
        cap = int(getattr(info, "vmem_capacity_bytes", 0)) or 64 * 1024 * 1024
    except Exception:
        cap = 64 * 1024 * 1024                       # conservative (v7x per-TC)
    if cap >= 100 * 1024 * 1024:                     # v5e / v6e: 128 MiB per TC
        budget = cap // 3
        limit = min(cap - 16 * 1024 * 1024, 110 * 1024 * 1024)
    else:                                            # v7x (64 MiB) or unknown
        budget = cap // 4
        limit = min(cap * 3 // 4, 48 * 1024 * 1024)
    return budget, limit


def _pick_row_tile(n_rows, lane_width, budget_bytes):
    """Row tile: multiple-of-8 divisor of n_rows, <= 1024 (tile sweeps plateau
    at 512-1024 rows), within the VMEM budget, leaving >= 2 grid steps."""
    cap = budget_bytes // (6 * lane_width * 4)       # ~6 buffered f32-equiv copies
    cap = max(8, min(cap, 1024))
    if n_rows >= 16:
        cap = min(cap, n_rows // 2)                  # guarantee >= 2 grid steps
    t = (min(cap, n_rows) // 8) * 8
    while t >= 8:
        if n_rows % t == 0:
            return t
        t -= 8
    # TODO(synk): pad rows / emit a remainder tile instead of this single-block
    # fallback when n_rows has no multiple-of-8 divisor.
    return n_rows


def _pick_batch(n, h, target_rows=256, max_rows=2048):
    """Images per conv1 grid step: enough rows to fill the MXU M dimension."""
    divs = [d for d in range(1, n + 1) if n % d == 0]
    for d in divs:
        if d * h >= target_rows:
            return d
    fit = [d for d in divs if d * h <= max_rows]
    return fit[-1] if fit else 1
    # TODO(synk): for very large H, halo-tile H instead of whole-image blocks.


def _bn_scale_shift(s_row, q_row, gamma, beta, w_spatial, count):
    """BN (train-mode, biased stats) -> lane-tiled scale/shift. One-pass
    E[x^2]-E[x]^2 in f32; fine at these scales.
    TODO(synk): shifted / two-pass variance for very large N*H*W."""
    c = gamma.shape[0]
    s = s_row.reshape(w_spatial, c).sum(axis=0)
    q = q_row.reshape(w_spatial, c).sum(axis=0)
    mean = s / count
    var = jnp.maximum(q / count - mean * mean, 0.0)
    scale = gamma * jax.lax.rsqrt(var + BN_EPS)
    shift = beta - mean * scale
    return (jnp.tile(scale, w_spatial)[None, :].astype(jnp.float32),
            jnp.tile(shift, w_spatial)[None, :].astype(jnp.float32))


# --------------------------------------------------------------------------- #
# Forward pass
# --------------------------------------------------------------------------- #
def separated_conv2d_block(x_nchw, params, size=3):
    """Equivalent of SeparatedConv2D_block.forward (training-mode BN)."""
    assert size % 2 == 1, "padding=(size-1)//2 is only 'same' for odd sizes"
    n, cin, h, w_sp = x_nchw.shape
    k = size
    pad = (size - 1) // 2
    cout = params["b1"].shape[0]
    wc_in, wc_out = w_sp * cin, w_sp * cout
    budget, vmem_limit = _vmem_caps()
    arb = pltpu.CompilerParams(dimension_semantics=("arbitrary",),
                               vmem_limit_bytes=vmem_limit)
    par = pltpu.CompilerParams(dimension_semantics=("parallel",),
                               vmem_limit_bytes=vmem_limit)

    # NCHW -> NHWC with (W, C) flattened onto the lane axis.
    x = jnp.transpose(x_nchw, (0, 2, 3, 1)).reshape(n, h, wc_in)

    # ---- conv1 (size x 1, along H) + LeakyReLU + BN1 stats ------------------ #
    eye_w = jnp.eye(w_sp, dtype=jnp.float32)
    w1k = jnp.stack([jnp.kron(eye_w, params["w1"][t]) for t in range(k)]
                    ).astype(jnp.bfloat16)                 # (K, W*Cin, W*Cout)
    b1t = jnp.tile(params["b1"], w_sp)[None, :]

    # Weight VMEM footprint check (v7x: 64 MiB/TC).
    weight_bytes = k * wc_in * wc_out * 2 + wc_out * wc_out * 2
    # TODO(synk): if weight_bytes > budget//3, tile the W*Cout axis with a 2nd
    # grid dim or switch to the channel-major (rows=N*H*W, lanes=C) layout.
    del weight_bytes

    row_bytes = wc_in * 4 + wc_out * (2 + 4)               # x + z1 + f32 acc per row
    max_rows = max(h, budget // max(3 * row_bytes, 1))
    bimg = _pick_batch(n, h, target_rows=256, max_rows=max_rows)
    g1 = n // bimg

    z1, s1, q1 = pl.pallas_call(
        functools.partial(_conv1_kernel, taps=k, pad=pad),
        out_shape=(jax.ShapeDtypeStruct((n, h, wc_out), jnp.bfloat16),
                   jax.ShapeDtypeStruct((1, wc_out), jnp.float32),
                   jax.ShapeDtypeStruct((1, wc_out), jnp.float32)),
        grid=(g1,),
        in_specs=[pl.BlockSpec((bimg, h, wc_in), lambda i: (i, 0, 0)),
                  pl.BlockSpec((k, wc_in, wc_out), lambda i: (0, 0, 0)),
                  pl.BlockSpec((1, wc_out), lambda i: (0, 0))],
        out_specs=(pl.BlockSpec((bimg, h, wc_out), lambda i: (i, 0, 0)),
                   pl.BlockSpec((1, wc_out), lambda i: (0, 0)),
                   pl.BlockSpec((1, wc_out), lambda i: (0, 0))),
        compiler_params=arb,
    )(x, w1k, b1t)

    scale1, shift1 = _bn_scale_shift(s1, q1, params["g1"], params["beta1"],
                                     w_sp, n * h * w_sp)

    # ---- BN1 affine (fused) + conv2 (1 x size, along W) + LeakyReLU + stats - #
    # conv2's taps shift inside the lane axis, so the whole conv is one banded
    # (W*C, W*Cout) matrix; out-of-range taps are absent == zero padding.
    w2band = sum(jnp.kron(jnp.eye(w_sp, k=pad - t, dtype=jnp.float32), params["w2"][t])
                 for t in range(k)).astype(jnp.bfloat16)
    b2t = jnp.tile(params["b2"], w_sp)[None, :]

    rows = n * h
    z1_2d = z1.reshape(rows, wc_out)
    tr = _pick_row_tile(rows, wc_out, budget)
    n_tiles = rows // tr

    z2, s2, q2 = pl.pallas_call(
        _conv2_kernel,
        out_shape=(jax.ShapeDtypeStruct((rows, wc_out), jnp.bfloat16),
                   jax.ShapeDtypeStruct((1, wc_out), jnp.float32),
                   jax.ShapeDtypeStruct((1, wc_out), jnp.float32)),
        grid=(n_tiles,),
        in_specs=[pl.BlockSpec((tr, wc_out), lambda i: (i, 0)),
                  pl.BlockSpec((1, wc_out), lambda i: (0, 0)),
                  pl.BlockSpec((1, wc_out), lambda i: (0, 0)),
                  pl.BlockSpec((wc_out, wc_out), lambda i: (0, 0)),
                  pl.BlockSpec((1, wc_out), lambda i: (0, 0))],
        out_specs=(pl.BlockSpec((tr, wc_out), lambda i: (i, 0)),
                   pl.BlockSpec((1, wc_out), lambda i: (0, 0)),
                   pl.BlockSpec((1, wc_out), lambda i: (0, 0))),
        compiler_params=arb,
    )(z1_2d, scale1, shift1, w2band, b2t)

    scale2, shift2 = _bn_scale_shift(s2, q2, params["g2"], params["beta2"],
                                     w_sp, n * h * w_sp)

    # ---- BN2 affine apply ---------------------------------------------------- #
    out2d = pl.pallas_call(
        _bn_apply_kernel,
        out_shape=jax.ShapeDtypeStruct((rows, wc_out), jnp.float32),
        grid=(n_tiles,),
        in_specs=[pl.BlockSpec((tr, wc_out), lambda i: (i, 0)),
                  pl.BlockSpec((1, wc_out), lambda i: (0, 0)),
                  pl.BlockSpec((1, wc_out), lambda i: (0, 0))],
        out_specs=pl.BlockSpec((tr, wc_out), lambda i: (i, 0)),
        compiler_params=par,
    )(z2, scale2, shift2)

    out = out2d.reshape(n, h, w_sp, cout)
    return jnp.transpose(out, (0, 3, 1, 2))          # NHWC -> NCHW (public API)


# --------------------------------------------------------------------------- #
# Parameters and pure-JAX reference
# --------------------------------------------------------------------------- #
def make_params(key, in_channels, out_channels, size=3):
    ks = jax.random.split(key, 6)
    return {
        # conv1 weight stored as (K, Cin, Cout)  (== torch (Cout,Cin,K,1) transposed)
        "w1": 0.1 * jax.random.normal(ks[0], (size, in_channels, out_channels), jnp.float32),
        "b1": 0.05 * jax.random.normal(ks[1], (out_channels,), jnp.float32),
        "g1": 1.0 + 0.1 * jax.random.normal(ks[2], (out_channels,), jnp.float32),
        "beta1": 0.1 * jax.random.normal(ks[3], (out_channels,), jnp.float32),
        # conv2 weight stored as (K, Cout, Cout)  (== torch (Cout,Cout,1,K) transposed)
        "w2": 0.1 * jax.random.normal(ks[4], (size, out_channels, out_channels), jnp.float32),
        "b2": 0.05 * jax.random.normal(ks[5], (out_channels,), jnp.float32),
        "g2": jnp.ones((out_channels,), jnp.float32),
        "beta2": jnp.zeros((out_channels,), jnp.float32),
    }


def _reference(x_nchw, params, size=3):
    """Pure-JAX reference mirroring the PyTorch module (train-mode BN, f32)."""
    pad = (size - 1) // 2

    def conv(x, w_oihw, b, pad_h, pad_w):
        y = jax.lax.conv_general_dilated(
            x, w_oihw, (1, 1), ((pad_h, pad_h), (pad_w, pad_w)),
            dimension_numbers=("NCHW", "OIHW", "NCHW"))
        return y + b.reshape(1, -1, 1, 1)

    def lrelu(x):
        return jnp.where(x > 0, x, LEAKY_SLOPE * x)

    def bn(x, g, be):
        mean = x.mean(axis=(0, 2, 3), keepdims=True)
        var = ((x - mean) ** 2).mean(axis=(0, 2, 3), keepdims=True)
        return (x - mean) * jax.lax.rsqrt(var + BN_EPS) * g.reshape(1, -1, 1, 1) \
            + be.reshape(1, -1, 1, 1)

    w1_oihw = jnp.transpose(params["w1"], (2, 1, 0))[:, :, :, None]  # (Cout,Cin,K,1)
    w2_oihw = jnp.transpose(params["w2"], (2, 1, 0))[:, :, None, :]  # (Cout,Cout,1,K)
    y = bn(lrelu(conv(x_nchw, w1_oihw, params["b1"], pad, 0)),
           params["g1"], params["beta1"])
    z = bn(lrelu(conv(y, w2_oihw, params["b2"], 0, pad)),
           params["g2"], params["beta2"])
    return z


if __name__ == "__main__":
    key = jax.random.PRNGKey(0)
    kx, kp = jax.random.split(key)

    N, Cin, H, W = 2, 4, 16, 16
    Cout, size = 8, 3

    x = jax.random.normal(kx, (N, Cin, H, W), jnp.float32)  # NCHW, like PyTorch
    params = make_params(kp, Cin, Cout, size)

    fwd = jax.jit(functools.partial(separated_conv2d_block, size=size))
    out = jax.block_until_ready(fwd(x, params))
    assert out.shape == (N, Cout, H, W), out.shape

    ref = _reference(x, params, size=size)
    err = float(jnp.max(jnp.abs(out - ref)))
    # bf16 MXU operands + bf16 HBM intermediates -> slightly looser tolerance
    assert jnp.allclose(out, ref, atol=3e-2, rtol=3e-2), err

    print("KERNEL_OK")
</pallas_src>

<mosaic_0001>
module attributes {stable_mosaic.version = 11 : i64} {
  func.func @_conv1_kernel(%arg0: i32, %arg1: memref<2x16x64xf32, #tpu.memory_space<vmem>>, %arg2: memref<3x64x128xbf16, #tpu.memory_space<vmem>>, %arg3: memref<1x128xf32, #tpu.memory_space<vmem>>, %arg4: memref<2x16x128xbf16, #tpu.memory_space<vmem>>, %arg5: memref<1x128xf32, #tpu.memory_space<vmem>>, %arg6: memref<1x128xf32, #tpu.memory_space<vmem>>) attributes {dimension_semantics = [#tpu.dimension_semantics<arbitrary>], iteration_bounds = array<i64: 1>, scalar_prefetch = 0 : i64, scratch_operands = 0 : i64, tpu.core_type = #tpu.core_type<tc>, window_params = [{transform_indices = @transform_0, window_bounds = array<i64: 2, 16, 64>}, {pipeline_mode = #tpu.pipeline_mode<synchronous>, transform_indices = @transform_1, window_bounds = array<i64: 3, 64, 128>}, {pipeline_mode = #tpu.pipeline_mode<synchronous>, transform_indices = @transform_2, window_bounds = array<i64: 1, 128>}, {transform_indices = @transform_3, window_bounds = array<i64: 2, 16, 128>}, {pipeline_mode = #tpu.pipeline_mode<synchronous>, transform_indices = @transform_4, window_bounds = array<i64: 1, 128>}, {pipeline_mode = #tpu.pipeline_mode<synchronous>, transform_indices = @transform_5, window_bounds = array<i64: 1, 128>}]} {
    %c0 = arith.constant 0 : index
    %c0_0 = arith.constant 0 : index
    %c0_1 = arith.constant 0 : index
    %0 = vector.load %arg1[%c0, %c0_0, %c0_1] : memref<2x16x64xf32, #tpu.memory_space<vmem>>, vector<2x16x64xf32>
    %cst = arith.constant 0.000000e+00 : f32
    %1 = vector.broadcast %cst : f32 to vector<2x1x64xf32>
    %2 = tpu.concatenate %1, %0, %1 in 1 : vector<2x1x64xf32>, vector<2x16x64xf32>, vector<2x1x64xf32> -> vector<2x18x64xf32>
    %3 = arith.truncf %2 : vector<2x18x64xf32> to vector<2x18x64xbf16>
    %cst_2 = arith.constant 0.000000e+00 : f32
    %4 = vector.broadcast %cst_2 : f32 to vector<32x128xf32>
    %5 = vector.extract_strided_slice %3 {offsets = [0, 0, 0], sizes = [2, 16, 64], strides = [1, 1, 1]} : vector<2x18x64xbf16> to vector<2x16x64xbf16>
    %6 = vector.shape_cast %5 : vector<2x16x64xbf16> to vector<32x64xbf16>
    %c0_3 = arith.constant 0 : index
    %c0_4 = arith.constant 0 : index
    %c0_5 = arith.constant 0 : index
    %7 = vector.load %arg2[%c0_3, %c0_4, %c0_5] : memref<3x64x128xbf16, #tpu.memory_space<vmem>>, vector<1x64x128xbf16>
    %8 = vector.shape_cast %7 : vector<1x64x128xbf16> to vector<64x128xbf16>
    %cst_6 = arith.constant dense<0.000000e+00> : vector<32x128xf32>
    %9 = tpu.matmul %6, %8, %cst_6 {dimension_numbers = #tpu.dot_dimension_numbers<[1], [0], [0], [1], [0, 0, 1, 1], [], []>} : vector<32x64xbf16>, vector<64x128xbf16>, vector<32x128xf32> -> vector<32x128xf32>
    %10 = arith.addf %4, %9 : vector<32x128xf32>
    %11 = vector.extract_strided_slice %3 {offsets = [0, 1, 0], sizes = [2, 16, 64], strides = [1, 1, 1]} : vector<2x18x64xbf16> to vector<2x16x64xbf16>
    %12 = vector.shape_cast %11 : vector<2x16x64xbf16> to vector<32x64xbf16>
    %c1 = arith.constant 1 : index
    %c0_7 = arith.constant 0 : index
    %c0_8 = arith.constant 0 : index
    %13 = vector.load %arg2[%c1, %c0_7, %c0_8] : memref<3x64x128xbf16, #tpu.memory_space<vmem>>, vector<1x64x128xbf16>
    %14 = vector.shape_cast %13 : vector<1x64x128xbf16> to vector<64x128xbf16>
    %cst_9 = arith.constant dense<0.000000e+00> : vector<32x128xf32>
    %15 = tpu.matmul %12, %14, %cst_9 {dimension_numbers = #tpu.dot_dimension_numbers<[1], [0], [0], [1], [0, 0, 1, 1], [], []>} : vector<32x64xbf16>, vector<64x128xbf16>, vector<32x128xf32> -> vector<32x128xf32>
    %16 = arith.addf %10, %15 : vector<32x128xf32>
    %17 = vector.extract_strided_slice %3 {offsets = [0, 2, 0], sizes = [2, 16, 64], strides = [1, 1, 1]} : vector<2x18x64xbf16> to vector<2x16x64xbf16>
    %18 = vector.shape_cast %17 : vector<2x16x64xbf16> to vector<32x64xbf16>
    %c2 = arith.constant 2 : index
    %c0_10 = arith.constant 0 : index
    %c0_11 = arith.constant 0 : index
    %19 = vector.load %arg2[%c2, %c0_10, %c0_11] : memref<3x64x128xbf16, #tpu.memory_space<vmem>>, vector<1x64x128xbf16>
    %20 = vector.shape_cast %19 : vector<1x64x128xbf16> to vector<64x128xbf16>
    %cst_12 = arith.constant dense<0.000000e+00> : vector<32x128xf32>
    %21 = tpu.matmul %18, %20, %cst_12 {dimension_numbers = #tpu.dot_dimension_numbers<[1], [0], [0], [1], [0, 0, 1, 1], [], []>} : vector<32x64xbf16>, vector<64x128xbf16>, vector<32x128xf32> -> vector<32x128xf32>
    %22 = arith.addf %16, %21 : vector<32x128xf32>
    %c0_13 = arith.constant 0 : index
    %c0_14 = arith.constant 0 : index
    %23 = vector.load %arg3[%c0_13, %c0_14] : memref<1x128xf32, #tpu.memory_space<vmem>>, vector<1x128xf32>
    %24 = vector.broadcast %23 : vector<1x128xf32> to vector<32x128xf32>
    %25 = arith.addf %22, %24 : vector<32x128xf32>
    %cst_15 = arith.constant 0.00999999977 : f32
    %26 = vector.broadcast %cst_15 : f32 to vector<32x128xf32>
    %27 = arith.mulf %26, %25 : vector<32x128xf32>
    %28 = arith.maximumf %25, %27 : vector<32x128xf32>
    %29 = vector.shape_cast %28 : vector<32x128xf32> to vector<2x16x128xf32>
    %30 = arith.truncf %29 : vector<2x16x128xf32> to vector<2x16x128xbf16>
    %c0_16 = arith.constant 0 : index
    %c0_17 = arith.constant 0 : index
    %c0_18 = arith.constant 0 : index
    %31 = vector.load %arg4[%c0_16, %c0_17, %c0_18] : memref<2x16x128xbf16, #tpu.memory_space<vmem>>, vector<2x16x128xbf16>
    tpu.vector_store %arg4[%c0_16, %c0_17, %c0_18], %30 {strides = array<i32>} : memref<2x16x128xbf16, #tpu.memory_space<vmem>>, vector<2x16x128xbf16>,
    %c0_i32 = arith.constant 0 : i32
    %32 = arith.cmpi eq, %arg0, %c0_i32 : i32
    %33 = arith.extui %32 : i1 to i32
    %c0_i32_19 = arith.constant 0 : i32
    %34 = arith.cmpi ne, %33, %c0_i32_19 : i32
    scf.if %34 {
      %cst_30 = arith.constant 0.000000e+00 : f32
      %46 = vector.broadcast %cst_30 : f32 to vector<1x128xf32>
      %c0_31 = arith.constant 0 : index
      %c0_32 = arith.constant 0 : index
      %47 = vector.load %arg5[%c0_31, %c0_32] : memref<1x128xf32, #tpu.memory_space<vmem>>, vector<1x128xf32>
      tpu.vector_store %arg5[%c0_31, %c0_32], %46 {strides = array<i32>} : memref<1x128xf32, #tpu.memory_space<vmem>>, vector<1x128xf32>,
      %cst_33 = arith.constant 0.000000e+00 : f32
      %48 = vector.broadcast %cst_33 : f32 to vector<1x128xf32>
      %c0_34 = arith.constant 0 : index
      %c0_35 = arith.constant 0 : index
      %49 = vector.load %arg6[%c0_34, %c0_35] : memref<1x128xf32, #tpu.memory_space<vmem>>, vector<1x128xf32>
      tpu.vector_store %arg6[%c0_34, %c0_35], %48 {strides = array<i32>} : memref<1x128xf32, #tpu.memory_space<vmem>>, vector<1x128xf32>,
    } else {
    }
    %c0_20 = arith.constant 0 : index
    %c0_21 = arith.constant 0 : index
    %35 = vector.load %arg5[%c0_20, %c0_21] : memref<1x128xf32, #tpu.memory_space<vmem>>, vector<1x128xf32>
    %cst_22 = arith.constant dense<0.000000e+00> : vector<128xf32>
    %36 = vector.multi_reduction <add>, %28, %cst_22 [0] : vector<32x128xf32> to vector<128xf32>
    %37 = vector.shape_cast %36 : vector<128xf32> to vector<1x128xf32>
    %38 = arith.addf %35, %37 : vector<1x128xf32>
    %c0_23 = arith.constant 0 : index
    %c0_24 = arith.constant 0 : index
    %39 = vector.load %arg5[%c0_23, %c0_24] : memref<1x128xf32, #tpu.memory_space<vmem>>, vector<1x128xf32>
    tpu.vector_store %arg5[%c0_23, %c0_24], %38 {strides = array<i32>} : memref<1x128xf32, #tpu.memory_space<vmem>>, vector<1x128xf32>,
    %c0_25 = arith.constant 0 : index
    %c0_26 = arith.constant 0 : index
    %40 = vector.load %arg6[%c0_25, %c0_26] : memref<1x128xf32, #tpu.memory_space<vmem>>, vector<1x128xf32>
    %41 = arith.mulf %28, %28 : vector<32x128xf32>
    %cst_27 = arith.constant dense<0.000000e+00> : vector<128xf32>
    %42 = vector.multi_reduction <add>, %41, %cst_27 [0] : vector<32x128xf32> to vector<128xf32>
    %43 = vector.shape_cast %42 : vector<128xf32> to vector<1x128xf32>
    %44 = arith.addf %40, %43 : vector<1x128xf32>
    %c0_28 = arith.constant 0 : index
    %c0_29 = arith.constant 0 : index
    %45 = vector.load %arg6[%c0_28, %c0_29] : memref<1x128xf32, #tpu.memory_space<vmem>>, vector<1x128xf32>
    tpu.vector_store %arg6[%c0_28, %c0_29], %44 {strides = array<i32>} : memref<1x128xf32, #tpu.memory_space<vmem>>, vector<1x128xf32>,
    return
  }
  func.func @transform_0(%arg0: i32) -> (i32, i32, i32) {
    %c0_i32 = arith.constant 0 : i32
    %c0_i32_0 = arith.constant 0 : i32
    %c0_i32_1 = arith.constant 0 : i32
    return %arg0, %c0_i32, %c0_i32_0 : i32, i32, i32
  }
  func.func @transform_1(%arg0: i32) -> (i32, i32, i32) {
    %c0_i32 = arith.constant 0 : i32
    %c0_i32_0 = arith.constant 0 : i32
    %c0_i32_1 = arith.constant 0 : i32
    %c0_i32_2 = arith.constant 0 : i32
    return %c0_i32, %c0_i32_0, %c0_i32_1 : i32, i32, i32
  }
  func.func @transform_2(%arg0: i32) -> (i32, i32) {
    %c0_i32 = arith.constant 0 : i32
    %c0_i32_0 = arith.constant 0 : i32
    %c0_i32_1 = arith.constant 0 : i32
    return %c0_i32, %c0_i32_0 : i32, i32
  }
  func.func @transform_3(%arg0: i32) -> (i32, i32, i32) {
    %c0_i32 = arith.constant 0 : i32
    %c0_i32_0 = arith.constant 0 : i32
    %c0_i32_1 = arith.constant 0 : i32
    return %arg0, %c0_i32, %c0_i32_0 : i32, i32, i32
  }
  func.func @transform_4(%arg0: i32) -> (i32, i32) {
    %c0_i32 = arith.constant 0 : i32
    %c0_i32_0 = arith.constant 0 : i32
    %c0_i32_1 = arith.constant 0 : i32
    return %c0_i32, %c0_i32_0 : i32, i32
  }
  func.func @transform_5(%arg0: i32) -> (i32, i32) {
    %c0_i32 = arith.constant 0 : i32
    %c0_i32_0 = arith.constant 0 : i32
    %c0_i32_1 = arith.constant 0 : i32
    return %c0_i32, %c0_i32_0 : i32, i32
  }
}

module attributes {stable_mosaic.version = 11 : i64} {
  func.func @_conv2_kernel(%arg0: i32, %arg1: memref<16x128xbf16, #tpu.memory_space<vmem>>, %arg2: memref<1x128xf32, #tpu.memory_space<vmem>>, %arg3: memref<1x128xf32, #tpu.memory_space<vmem>>, %arg4: memref<128x128xbf16, #tpu.memory_space<vmem>>, %arg5: memref<1x128xf32, #tpu.memory_space<vmem>>, %arg6: memref<16x128xbf16, #tpu.memory_space<vmem>>, %arg7: memref<1x128xf32, #tpu.memory_space<vmem>>, %arg8: memref<1x128xf32, #tpu.memory_space<vmem>>) attributes {dimension_semantics = [#tpu.dimension_semantics<arbitrary>], iteration_bounds = array<i64: 2>, scalar_prefetch = 0 : i64, scratch_operands = 0 : i64, tpu.core_type = #tpu.core_type<tc>, window_params = [{transform_indices = @transform_0, window_bounds = array<i64: 16, 128>}, {pipeline_mode = #tpu.pipeline_mode<synchronous>, transform_indices = @transform_1, window_bounds = array<i64: 1, 128>}, {pipeline_mode = #tpu.pipeline_mode<synchronous>, transform_indices = @transform_2, window_bounds = array<i64: 1, 128>}, {pipeline_mode = #tpu.pipeline_mode<synchronous>, transform_indices = @transform_3, window_bounds = array<i64: 128, 128>}, {pipeline_mode = #tpu.pipeline_mode<synchronous>, transform_indices = @transform_4, window_bounds = array<i64: 1, 128>}, {transform_indices = @transform_5, window_bounds = array<i64: 16, 128>}, {pipeline_mode = #tpu.pipeline_mode<synchronous>, transform_indices = @transform_6, window_bounds = array<i64: 1, 128>}, {pipeline_mode = #tpu.pipeline_mode<synchronous>, transform_indices = @transform_7, window_bounds = array<i64: 1, 128>}]} {
    %c0 = arith.constant 0 : index
    %c0_0 = arith.constant 0 : index
    %0 = vector.load %arg1[%c0, %c0_0] : memref<16x128xbf16, #tpu.memory_space<vmem>>, vector<16x128xbf16>
    %1 = arith.extf %0 : vector<16x128xbf16> to vector<16x128xf32>
    %c0_1 = arith.constant 0 : index
    %c0_2 = arith.constant 0 : index
    %2 = vector.load %arg2[%c0_1, %c0_2] : memref<1x128xf32, #tpu.memory_space<vmem>>, vector<1x128xf32>
    %3 = vector.broadcast %2 : vector<1x128xf32> to vector<16x128xf32>
    %4 = arith.mulf %1, %3 : vector<16x128xf32>
    %c0_3 = arith.constant 0 : index
    %c0_4 = arith.constant 0 : index
    %5 = vector.load %arg3[%c0_3, %c0_4] : memref<1x128xf32, #tpu.memory_space<vmem>>, vector<1x128xf32>
    %6 = vector.broadcast %5 : vector<1x128xf32> to vector<16x128xf32>
    %7 = arith.addf %4, %6 : vector<16x128xf32>
    %8 = arith.truncf %7 : vector<16x128xf32> to vector<16x128xbf16>
    %c0_5 = arith.constant 0 : index
    %c0_6 = arith.constant 0 : index
    %9 = vector.load %arg4[%c0_5, %c0_6] : memref<128x128xbf16, #tpu.memory_space<vmem>>, vector<128x128xbf16>
    %cst = arith.constant dense<0.000000e+00> : vector<16x128xf32>
    %10 = tpu.matmul %8, %9, %cst {dimension_numbers = #tpu.dot_dimension_numbers<[1], [0], [0], [1], [0, 0, 1, 1], [], []>} : vector<16x128xbf16>, vector<128x128xbf16>, vector<16x128xf32> -> vector<16x128xf32>
    %c0_7 = arith.constant 0 : index
    %c0_8 = arith.constant 0 : index
    %11 = vector.load %arg5[%c0_7, %c0_8] : memref<1x128xf32, #tpu.memory_space<vmem>>, vector<1x128xf32>
    %12 = vector.broadcast %11 : vector<1x128xf32> to vector<16x128xf32>
    %13 = arith.addf %10, %12 : vector<16x128xf32>
    %cst_9 = arith.constant 0.00999999977 : f32
    %14 = vector.broadcast %cst_9 : f32 to vector<16x128xf32>
    %15 = arith.mulf %14, %13 : vector<16x128xf32>
    %16 = arith.maximumf %13, %15 : vector<16x128xf32>
    %17 = arith.truncf %16 : vector<16x128xf32> to vector<16x128xbf16>
    %c0_10 = arith.constant 0 : index
    %c0_11 = arith.constant 0 : index
    %18 = vector.load %arg6[%c0_10, %c0_11] : memref<16x128xbf16, #tpu.memory_space<vmem>>, vector<16x128xbf16>
    tpu.vector_store %arg6[%c0_10, %c0_11], %17 {strides = array<i32>} : memref<16x128xbf16, #tpu.memory_space<vmem>>, vector<16x128xbf16>,
    %c0_i32 = arith.constant 0 : i32
    %19 = arith.cmpi eq, %arg0, %c0_i32 : i32
    %20 = arith.extui %19 : i1 to i32
    %c0_i32_12 = arith.constant 0 : i32
    %21 = arith.cmpi ne, %20, %c0_i32_12 : i32
    scf.if %21 {
      %cst_23 = arith.constant 0.000000e+00 : f32
      %33 = vector.broadcast %cst_23 : f32 to vector<1x128xf32>
      %c0_24 = arith.constant 0 : index
      %c0_25 = arith.constant 0 : index
      %34 = vector.load %arg7[%c0_24, %c0_25] : memref<1x128xf32, #tpu.memory_space<vmem>>, vector<1x128xf32>
      tpu.vector_store %arg7[%c0_24, %c0_25], %33 {strides = array<i32>} : memref<1x128xf32, #tpu.memory_space<vmem>>, vector<1x128xf32>,
      %cst_26 = arith.constant 0.000000e+00 : f32
      %35 = vector.broadcast %cst_26 : f32 to vector<1x128xf32>
      %c0_27 = arith.constant 0 : index
      %c0_28 = arith.constant 0 : index
      %36 = vector.load %arg8[%c0_27, %c0_28] : memref<1x128xf32, #tpu.memory_space<vmem>>, vector<1x128xf32>
      tpu.vector_store %arg8[%c0_27, %c0_28], %35 {strides = array<i32>} : memref<1x128xf32, #tpu.memory_space<vmem>>, vector<1x128xf32>,
    } else {
    }
    %c0_13 = arith.constant 0 : index
    %c0_14 = arith.constant 0 : index
    %22 = vector.load %arg7[%c0_13, %c0_14] : memref<1x128xf32, #tpu.memory_space<vmem>>, vector<1x128xf32>
    %cst_15 = arith.constant dense<0.000000e+00> : vector<128xf32>
    %23 = vector.multi_reduction <add>, %16, %cst_15 [0] : vector<16x128xf32> to vector<128xf32>
    %24 = vector.shape_cast %23 : vector<128xf32> to vector<1x128xf32>
    %25 = arith.addf %22, %24 : vector<1x128xf32>
    %c0_16 = arith.constant 0 : index
    %c0_17 = arith.constant 0 : index
    %26 = vector.load %arg7[%c0_16, %c0_17] : memref<1x128xf32, #tpu.memory_space<vmem>>, vector<1x128xf32>
    tpu.vector_store %arg7[%c0_16, %c0_17], %25 {strides = array<i32>} : memref<1x128xf32, #tpu.memory_space<vmem>>, vector<1x128xf32>,
    %c0_18 = arith.constant 0 : index
    %c0_19 = arith.constant 0 : index
    %27 = vector.load %arg8[%c0_18, %c0_19] : memref<1x128xf32, #tpu.memory_space<vmem>>, vector<1x128xf32>
    %28 = arith.mulf %16, %16 : vector<16x128xf32>
    %cst_20 = arith.constant dense<0.000000e+00> : vector<128xf32>
    %29 = vector.multi_reduction <add>, %28, %cst_20 [0] : vector<16x128xf32> to vector<128xf32>
    %30 = vector.shape_cast %29 : vector<128xf32> to vector<1x128xf32>
    %31 = arith.addf %27, %30 : vector<1x128xf32>
    %c0_21 = arith.constant 0 : index
    %c0_22 = arith.constant 0 : index
    %32 = vector.load %arg8[%c0_21, %c0_22] : memref<1x128xf32, #tpu.memory_space<vmem>>, vector<1x128xf32>
    tpu.vector_store %arg8[%c0_21, %c0_22], %31 {strides = array<i32>} : memref<1x128xf32, #tpu.memory_space<vmem>>, vector<1x128xf32>,
    return
  }
  func.func @transform_0(%arg0: i32) -> (i32, i32) {
    %c0_i32 = arith.constant 0 : i32
    %c0_i32_0 = arith.constant 0 : i32
    return %arg0, %c0_i32 : i32, i32
  }
  func.func @transform_1(%arg0: i32) -> (i32, i32) {
    %c0_i32 = arith.constant 0 : i32
    %c0_i32_0 = arith.constant 0 : i32
    %c0_i32_1 = arith.constant 0 : i32
    return %c0_i32, %c0_i32_0 : i32, i32
  }
  func.func @transform_2(%arg0: i32) -> (i32, i32) {
    %c0_i32 = arith.constant 0 : i32
    %c0_i32_0 = arith.constant 0 : i32
    %c0_i32_1 = arith.constant 0 : i32
    return %c0_i32, %c0_i32_0 : i32, i32
  }
  func.func @transform_3(%arg0: i32) -> (i32, i32) {
    %c0_i32 = arith.constant 0 : i32
    %c0_i32_0 = arith.constant 0 : i32
    %c0_i32_1 = arith.constant 0 : i32
    return %c0_i32, %c0_i32_0 : i32, i32
  }
  func.func @transform_4(%arg0: i32) -> (i32, i32) {
    %c0_i32 = arith.constant 0 : i32
    %c0_i32_0 = arith.constant 0 : i32
    %c0_i32_1 = arith.constant 0 : i32
    return %c0_i32, %c0_i32_0 : i32, i32
  }
  func.func @transform_5(%arg0: i32) -> (i32, i32) {
    %c0_i32 = arith.constant 0 : i32
    %c0_i32_0 = arith.constant 0 : i32
    return %arg0, %c0_i32 : i32, i32
  }
  func.func @transform_6(%arg0: i32) -> (i32, i32) {
    %c0_i32 = arith.constant 0 : i32
    %c0_i32_0 = arith.constant 0 : i32
    %c0_i32_1 = arith.constant 0 : i32
    return %c0_i32, %c0_i32_0 : i32, i32
  }
  func.func @transform_7(%arg0: i32) -> (i32, i32) {
    %c0_i32 = arith.constant 0 : i32
    %c0_i32_0 = arith.constant 0 : i32
    %c0_i32_1 = arith.constant 0 : i32
    return %c0_i32, %c0_i32_0 : i32, i32
  }
}

module attributes {stable_mosaic.version = 11 : i64} {
  func.func @_bn_apply_kernel(%arg0: i32, %arg1: memref<16x128xbf16, #tpu.memory_space<vmem>>, %arg2: memref<1x128xf32, #tpu.memory_space<vmem>>, %arg3: memref<1x128xf32, #tpu.memory_space<vmem>>, %arg4: memref<16x128xf32, #tpu.memory_space<vmem>>) attributes {dimension_semantics = [#tpu.dimension_semantics<parallel>], iteration_bounds = array<i64: 2>, scalar_prefetch = 0 : i64, scratch_operands = 0 : i64, tpu.core_type = #tpu.core_type<tc>, window_params = [{transform_indices = @transform_0, window_bounds = array<i64: 16, 128>}, {pipeline_mode = #tpu.pipeline_mode<synchronous>, transform_indices = @transform_1, window_bounds = array<i64: 1, 128>}, {pipeline_mode = #tpu.pipeline_mode<synchronous>, transform_indices = @transform_2, window_bounds = array<i64: 1, 128>}, {transform_indices = @transform_3, window_bounds = array<i64: 16, 128>}]} {
    %c0 = arith.constant 0 : index
    %c0_0 = arith.constant 0 : index
    %0 = vector.load %arg1[%c0, %c0_0] : memref<16x128xbf16, #tpu.memory_space<vmem>>, vector<16x128xbf16>
    %1 = arith.extf %0 : vector<16x128xbf16> to vector<16x128xf32>
    %c0_1 = arith.constant 0 : index
    %c0_2 = arith.constant 0 : index
    %2 = vector.load %arg2[%c0_1, %c0_2] : memref<1x128xf32, #tpu.memory_space<vmem>>, vector<1x128xf32>
    %3 = vector.broadcast %2 : vector<1x128xf32> to vector<16x128xf32>
    %4 = arith.mulf %1, %3 : vector<16x128xf32>
    %c0_3 = arith.constant 0 : index
    %c0_4 = arith.constant 0 : index
    %5 = vector.load %arg3[%c0_3, %c0_4] : memref<1x128xf32, #tpu.memory_space<vmem>>, vector<1x128xf32>
    %6 = vector.broadcast %5 : vector<1x128xf32> to vector<16x128xf32>
    %7 = arith.addf %4, %6 : vector<16x128xf32>
    %c0_5 = arith.constant 0 : index
    %c0_6 = arith.constant 0 : index
    %8 = vector.load %arg4[%c0_5, %c0_6] : memref<16x128xf32, #tpu.memory_space<vmem>>, vector<16x128xf32>
    tpu.vector_store %arg4[%c0_5, %c0_6], %7 {strides = array<i32>} : memref<16x128xf32, #tpu.memory_space<vmem>>, vector<16x128xf32>,
    return
  }
  func.func @transform_0(%arg0: i32) -> (i32, i32) {
    %c0_i32 = arith.constant 0 : i32
    %c0_i32_0 = arith.constant 0 : i32
    return %arg0, %c0_i32 : i32, i32
  }
  func.func @transform_1(%arg0: i32) -> (i32, i32) {
    %c0_i32 = arith.constant 0 : i32
    %c0_i32_0 = arith.constant 0 : i32
    %c0_i32_1 = arith.constant 0 : i32
    return %c0_i32, %c0_i32_0 : i32, i32
  }
  func.func @transform_2(%arg0: i32) -> (i32, i32) {
    %c0_i32 = arith.constant 0 : i32
    %c0_i32_0 = arith.constant 0 : i32
    %c0_i32_1 = arith.constant 0 : i32
    return %c0_i32, %c0_i32_0 : i32, i32
  }
  func.func @transform_3(%arg0: i32) -> (i32, i32) {
    %c0_i32 = arith.constant 0 : i32
    %c0_i32_0 = arith.constant 0 : i32
    return %arg0, %c0_i32 : i32, i32
  }
}

</mosaic_0001>

<bundles_post_ra>
// kernel: tile.33
= control target key start
LH: loop header
LB: loop body
LE: loop exit
PB: predicated region body
PF: predicated region fallthrough
CT: control target
= control target key end

     0   :  { %s28_s0 = inlined_call_operand.vmem [shape: f32[8], index: 0, kind: input, shape index: {}]   ;;  %s29_s1 = inlined_call_operand.vmem [shape: f32[16,8], index: 1, kind: output, shape index: {}]  }
   0x1   :  { %v4_v0 = vld [vmem:[%s28_s0] ss:$0 sm:$0xff] }
   0x2   :  { %5 = vst [vmem:[%s29_s1] sm:$0xff] %v4_v0  ;;  %8 = vst [vmem:[%s29_s1 + $0x8] sm:$0xff] %v4_v0 }

// kernel: tile.34
= control target key start
LH: loop header
LB: loop body
LE: loop exit
PB: predicated region body
PF: predicated region fallthrough
CT: control target
= control target key end

     0   :  { %s131_s10 = smov 120   ;;  %s132_s11 = smov 104   ;;  %vm3_vm0 = vcmask 64512   ;;  %vm9_vm1 = vcmask 1048512   ;;  %vm15_vm2 = vcmask 982912   ;;  %vm21_vm3 = vcmask 917312   ;;  %s207_s0 = inlined_call_operand.vmem [shape: f32[16,8], index: 0, kind: input, shape index: {}]   ;;  %s208_s1 = inlined_call_operand.vmem [shape: f32[1,128], index: 1, kind: output, shape index: {}]  }
   0x1   :  { %v101_v0 = vld [vmem:[%s207_s0 + $0xf] sm:$0x1]   ;;  %v103_v1 = vld [vmem:[%s207_s0 + $0xd] sm:$0x1]   ;;  %v102_v2 = vld [vmem:[%s207_s0 + $0xe] sm:$0x1]  }
   0x2   :  { %7 = vrot.lane.b32.xlu0 %v101_v0, %s131_s10  ;;  %19 = vrot.lane.b32.xlu1 %v103_v1, %s132_s11  ;;  %v104_v3 = vld [vmem:[%s207_s0 + $0xc] sm:$0x1]   ;;  %s133_s16 = smov 112   ;;  %s134_s17 = smov 96   ;;  %v105_v4 = vld [vmem:[%s207_s0 + $0xb] sm:$0x1]  }
   0x3   :  { %v106_v5 = vld [vmem:[%s207_s0 + $0xa] sm:$0x1]   ;;  %v2_v6 = vld [vmem:[%s207_s0] sm:$0x1]   ;;  %s135_s24 = smov 88   ;;  %s136_s25 = smov 80  }
   0x4   :  { %4 = vst.msk [vmem:[#allocation0] sm:$0x1] %vm3_vm0, %v2_v6   ;;  %v107_v7 = vld [vmem:[%s207_s0 + $0x9] sm:$0x1]   ;;  %v108_v8 = vld [vmem:[%s207_s0 + $0x8] sm:$0x1]  }
   0x5   :  { %s137_s30 = smov 72   ;;  %s138_s2 = smov 64   ;;  %v109_v9 = vld [vmem:[%s207_s0 + $0x7] sm:$0x1]   ;;  %v110_v10 = vld [vmem:[%s207_s0 + $0x6] sm:$0x1]  }
   0x6   :  { %13 = vrot.lane.b32.xlu0 %v102_v2, %s133_s16  ;;  %25 = vrot.lane.b32.xlu1 %v104_v3, %s134_s17  ;;  %s139_s7 = smov 56   ;;  %s140_s8 = smov 48   ;;  %v111_v11 = vld [vmem:[%s207_s0 + $0x5] sm:$0x1]   ;;  %v112_v12 = vld [vmem:[%s207_s0 + $0x4] sm:$0x1]  }
   0x7   :  { %s141_s13 = smov 40   ;;  %s142_s14 = smov 32   ;;  %v113_v13 = vld [vmem:[%s207_s0 + $0x3] sm:$0x1]   ;;  %v114_v14 = vld [vmem:[%s207_s0 + $0x2] sm:$0x1]  }
   0x8   :  { %s143_s19 = smov 24   ;;  %s144_s20 = smov 16   ;;  %v115_v15 = vld [vmem:[%s207_s0 + $0x1] sm:$0x1]   ;;  %vm27_vm4 = vcmask 851712   ;;  %vm33_vm5 = vcmask 786112  }
   0x9   :  { %s145_s0 = smov 8   ;;  %vm39_vm6 = vcmask 720512   ;;  %vm45_vm7 = vcmask 654912   ;;  %vm51_vm8 = vcmask 589312   ;;  %vm57_vm9 = vcmask 523712  }
   0xa   :  { %31 = vrot.lane.b32.xlu0 %v105_v4, %s135_s24  ;;  %37 = vrot.lane.b32.xlu1 %v106_v5, %s136_s25  ;;  %vm63_vm10 = vcmask 458112   ;;  %vm69_vm11 = vcmask 392512   ;;  %vm75_vm12 = vcmask 326912   ;;  %vm81_vm13 = vcmask 261312  }
   0xb   :  { %vm87_vm14 = vcmask 195712   ;;  %vm93_vm15 = vcmask 130112  }
   0xe   :  { %43 = vrot.lane.b32.xlu0 %v107_v7, %s137_s30  ;;  %49 = vrot.lane.b32.xlu1 %v108_v8, %s138_s2 }
  0x12   :  { %55 = vrot.lane.b32.xlu0 %v109_v9, %s139_s7  ;;  %61 = vrot.lane.b32.xlu1 %v110_v10, %s140_s8 }
  0x16   :  { %67 = vrot.lane.b32.xlu0 %v111_v11, %s141_s13  ;;  %73 = vrot.lane.b32.xlu1 %v112_v12, %s142_s14 }
  0x1a   :  { %79 = vrot.lane.b32.xlu0 %v113_v13, %s143_s19  ;;  %85 = vrot.lane.b32.xlu1 %v114_v14, %s144_s20 }
  0x1e   :  { %91 = vrot.lane.b32.xlu0 %v115_v15, %s145_s0 }
  0x74   :  { %v8_v16 = vpop.permute.xlu0 %7   ;;  %v20_v17 = vpop.permute.xlu1 %19  }
  0x75   :  { %10 = vst.msk [vmem:[#allocation0] sm:$0x1] %vm9_vm1, %v8_v16  }
  0x78   :  { %v14_v18 = vpop.permute.xlu0 %13   ;;  %v26_v19 = vpop.permute.xlu1 %25  }
  0x79   :  { %16 = vst.msk [vmem:[#allocation0] sm:$0x1] %vm15_vm2, %v14_v18  }
  0x7a   :  { %22 = vst.msk [vmem:[#allocation0] sm:$0x1] %vm21_vm3, %v20_v17  }
  0x7b   :  { %28 = vst.msk [vmem:[#allocation0] sm:$0x1] %vm27_vm4, %v26_v19  }
  0x7c   :  { %v32_v20 = vpop.permute.xlu0 %31   ;;  %v38_v21 = vpop.permute.xlu1 %37  }
  0x7d   :  { %34 = vst.msk [vmem:[#allocation0] sm:$0x1] %vm33_vm5, %v32_v20  }
  0x7e   :  { %40 = vst.msk [vmem:[#allocation0] sm:$0x1] %vm39_vm6, %v38_v21  }
  0x80   :  { %v44_v22 = vpop.permute.xlu0 %43   ;;  %v50_v23 = vpop.permute.xlu1 %49  }
  0x81   :  { %46 = vst.msk [vmem:[#allocation0] sm:$0x1] %vm45_vm7, %v44_v22  }
  0x82   :  { %52 = vst.msk [vmem:[#allocation0] sm:$0x1] %vm51_vm8, %v50_v23  }
  0x84   :  { %v56_v24 = vpop.permute.xlu0 %55   ;;  %v62_v25 = vpop.permute.xlu1 %61  }
  0x85   :  { %58 = vst.msk [vmem:[#allocation0] sm:$0x1] %vm57_vm9, %v56_v24  }
  0x86   :  { %64 = vst.msk [vmem:[#allocation0] sm:$0x1] %vm63_vm10, %v62_v25  }
  0x88   :  { %v68_v26 = vpop.permute.xlu0 %67   ;;  %v74_v27 = vpop.permute.xlu1 %73  }
  0x89   :  { %70 = vst.msk [vmem:[#allocation0] sm:$0x1] %vm69_vm11, %v68_v26  }
  0x8a   :  { %76 = vst.msk [vmem:[#allocation0] sm:$0x1] %vm75_vm12, %v74_v27  }
  0x8c   :  { %v80_v28 = vpop.permute.xlu0 %79   ;;  %v86_v29 = vpop.permute.xlu1 %85  }
  0x8d   :  { %82 = vst.msk [vmem:[#allocation0] sm:$0x1] %vm81_vm13, %v80_v28  }
  0x8e   :  { %88 = vst.msk [vmem:[#allocation0] sm:$0x1] %vm87_vm14, %v86_v29  }
  0x90   :  { %v92_v30 = vpop.permute.xlu0 %91  }
  0x91   :  { %94 = vst.msk [vmem:[#allocation0] sm:$0x1] %vm93_vm15, %v92_v30  }
  0x98   :  { %v98_v31 = vld [vmem:[#allocation0] sm:$0x1] }
  0x99   :  { %100 = vst [vmem:[%s208_s1] sm:$0x1] %v98_v31 }

// kernel: separated_conv2d_block.3
= control target key start
LH: loop header
LB: loop body
LE: loop exit
PB: predicated region body
PF: predicated region fallthrough
CT: control target
= control target key end

     0   :  { %vm26_vm0 = vcmask 1040384   ;;  %vm113_vm1 = vcmask 523264   ;;  %vm250_vm2 = vcmask 1046528   ;;  %vm55_vm3 = vsmask.f32 7424  ;;  %s685_s1 = inlined_call_operand.vmem [shape: bf16[3,64,128], index: 1, kind: input, shape index: {}]   ;;  %s686_s0 = inlined_call_operand.vmem [shape: f32[2,16,64], index: 0, kind: input, shape index: {}]   ;;  %s687_s4 = inlined_call_operand.vmem [shape: f32[1,128], index: 4, kind: output, shape index: {1}]   ;;  %s688_s5 = inlined_call_operand.vmem [shape: f32[1,128], index: 5, kind: output, shape index: {2}]   ;;  %s689_s2 = inlined_call_operand.vmem [shape: f32[1,128], index: 2, kind: input, shape index: {}]   ;;  %s690_s3 = inlined_call_operand.vmem [shape: bf16[2,16,128], index: 3, kind: output, shape index: {0}]  }
   0x1   :  { %v551_v0 = vld [vmem:[%s685_s1] sm:$0xff]   ;;  %v552_v1 = vld [vmem:[%s685_s1 + $0x8] sm:$0xff]   ;;  %v553_v2 = vld [vmem:[%s685_s1 + $0x10] sm:$0xff]   ;;  %v563_v50 = vmov 0.0  }
   0x2   :  { %518 = vmatprep.subr.bf16.mxu0 %v551_v0  ;;  %v555_v3 = vld [vmem:[%s685_s1 + $0x20] sm:$0xff]   ;;  %v19_v5 = vld [vmem:[%s686_s0 + $0x8] sm:$0xff]  ;;  %v20_v9 = vld [vmem:[%s686_s0 + $0x10] sm:$0xff]  ;;  %392 = vst [vmem:[%s687_s4] sm:$0x1] %v563_v50 }
   0x3   :  { %519 = vmatpush3.bf16.msra.mxu0 %v551_v0  ;;  %v18_v4 = vld [vmem:[%s686_s0] sm:$0xff]  ;;  %506 = vmatprep.subr.bf16.mxu1 %v555_v3  ;;  %v28_v7 = vrot.slane %v19_v5, 7  ;;  %v557_v8 = vld [vmem:[%s685_s1 + $0x28] sm:$0xff]   ;;  %v554_v10 = vld [vmem:[%s685_s1 + $0x18] sm:$0xff]   ;;  %v30_v14 = vrot.slane %v20_v9, 7  ;;  %393 = vst [vmem:[%s688_s5] sm:$0x1] %v563_v50 }
   0x4   :  { %520 = vmatprep.subr.bf16.mxu0 %v552_v1  ;;  %v27_v6 = vrot.slane %v18_v4, 7  ;;  %507 = vmatpush3.bf16.msra.mxu1 %v555_v3  ;;  %v21_v13 = vld [vmem:[%s686_s0 + $0x18] sm:$0xff]  ;;  %v559_v17 = vld [vmem:[%s685_s1 + $0x30] sm:$0xff]   ;;  %v556_v20 = vld [vmem:[%s685_s1 + $0x40] sm:$0xff]  }
   0x5   :  { %508 = vmatprep.subr.bf16.mxu1 %v557_v8  ;;  %v31_v16 = vrot.slane %v21_v13, 7  ;;  %v40_v18 = vsel %vm26_vm0, 0.0, %v30_v14  ;;  %v41_v22 = vsel %vm26_vm0, %v28_v7, 0.0  ;;  %v561_v25 = vld [vmem:[%s685_s1 + $0x38] sm:$0xff]   ;;  %v558_v35 = vld [vmem:[%s685_s1 + $0x48] sm:$0xff]   ;;  %v560_v44 = vld [vmem:[%s685_s1 + $0x50] sm:$0xff]  }
   0x6   :  { %v29_v11 = vsel %vm26_vm0, %v27_v6, %v28_v7  ;;  %v39_v12 = vsel %vm26_vm0, 0.0, %v27_v6  ;;  %v44_v26 = vpack.c.bf16 %v41_v22, %v41_v22  ;;  %v562_v46 = vld [vmem:[%s685_s1 + $0x58] sm:$0xff]   ;;  %v468_v56 = vld [vmem:[%s689_s2] ss:$0 sm:$0xff] }
   0x7   :  { %521 = vmatpush3.bf16.msra.mxu0 %v552_v1  ;;  %v43_v15 = vpack.c.bf16 %v29_v11, %v39_v12  ;;  %v32_v19 = vsel %vm26_vm0, %v30_v14, %v31_v16  ;;  %v42_v27 = vsel %vm26_vm0, %v31_v16, 0.0 }
   0x8   :  { %522 = vmatprep.subr.bf16.mxu0 %v553_v2  ;;  %v45_v21 = vpack.c.bf16 %v32_v19, %v40_v18  ;;  %509 = vmatpush3.bf16.msra.mxu1 %v557_v8  ;;  %v46_v30 = vpack.c.bf16 %v42_v27, %v42_v27  ;;  %v64_v33 = vshll.u32 %v44_v26, 16  ;;  %v252_v34 = vrot.slane %v44_v26, 1 }
   0x9   :  { %526 = vmatprep.mubr.msk.bf16.mxu0 %vm113_vm1, %v43_v15  ;;  %v57_v23 = vshrl.u32 %v43_v15, 16  ;;  %v59_v24 = vshll.u32 %v43_v15, 16  ;;  %510 = vmatprep.subr.bf16.mxu1 %v559_v17  ;;  %v251_v28 = vrot.slane %v43_v15, 1 }
   0xa   :  { %v69_v31 = vshrl.u32 %v45_v21, 16  ;;  %v71_v32 = vshll.u32 %v45_v21, 16  ;;  %v76_v38 = vshll.u32 %v46_v30, 16  ;;  %v66_v39 = vrot.slane %v64_v33, 1  ;;  %v394_v33 = vld [vmem:[%s687_s4] sm:$0x1] }
   0xb   :  { %523 = vmatpush3.bf16.msra.mxu0 %v553_v2  ;;  %v61_v29 = vrot.slane %v59_v24, 1  ;;  %v253_v40 = vsel %vm250_vm2, %v251_v28, %v252_v34  ;;  %v254_v47 = vrot.slane %v45_v21, 1  ;;  %v255_v48 = vrot.slane %v46_v30, 1 }
   0xc   :  { %524 = vmatprep.subr.bf16.mxu0 %v554_v10  ;;  %511 = vmatpush3.bf16.msra.mxu1 %v559_v17  ;;  %v73_v37 = vrot.slane %v71_v32, 1  ;;  %v78_v42 = vrot.slane %v76_v38, 1 }
   0xd   :  { %v62_v36 = vor.u32 %v61_v29, %v57_v23  ;;  %512 = vmatprep.subr.bf16.mxu1 %v561_v25  ;;  %v256_v49 = vsel %vm250_vm2, %v254_v47, %v255_v48 }
   0xe   :  { %v74_v41 = vor.u32 %v73_v37, %v69_v31 }
   0xf   :  { %525 = vmatpush3.bf16.msra.mxu0 %v554_v10  ;;  %v67_v43 = vsel %vm55_vm3, %v62_v36, %v66_v39  ;;  %v406_v36 = vld [vmem:[%s688_s5] sm:$0x1] }
  0x10   :  { %530 = vmatprep.subr.bf16.mxu0 %v556_v20  ;;  %513 = vmatpush3.bf16.msra.mxu1 %v561_v25  ;;  %v79_v45 = vsel %vm55_vm3, %v74_v41, %v78_v42 }
  0x11   :  { %514 = vmatprep.mubr.msk.bf16.mxu1 %vm113_vm1, %v67_v43 }
  0x12   :  { %527 = vmatmul.mubr.msk.bf16.vlgmr.msra.gmra.mrb[0].mxu0 %vm113_vm1, %v45_v21 }
  0x13   :  { %531 = vmatpush3.bf16.msra.mxu0 %v556_v20  ;;  %538 = vmatprep.mubr.msk.bf16.mxu0 %vm113_vm1, %v253_v40 }
  0x14   :  { %532 = vmatprep.subr.bf16.mxu0 %v558_v35  ;;  %515 = vmatmul.mubr.msk.bf16.vlgmr.msra.gmra.mrb[0].mxu1 %vm113_vm1, %v79_v45 }
  0x17   :  { %533 = vmatpush3.bf16.msra.mxu0 %v558_v35 }
  0x18   :  { %534 = vmatprep.subr.bf16.mxu0 %v560_v44 }
  0x1b   :  { %535 = vmatpush3.bf16.msra.mxu0 %v560_v44 }
  0x1c   :  { %536 = vmatprep.subr.bf16.mxu0 %v562_v46 }
  0x1f   :  { %537 = vmatpush3.bf16.msra.mxu0 %v562_v46 }
  0x22   :  { %539 = vmatmul.mubr.msk.bf16.vlgmr.msra.gmra.mrb[0].mxu0 %vm113_vm1, %v256_v49 }
  0xe7   :  { %v516_v51 = vpop.f32.mrb[0].mxu1 }
  0xe8   :  { %v154_v52 = vpop.f32.mrb[1].mxu1 }
  0xe9   :  { %v517_v53 = vpop.f32.mrb[2].mxu1 }
  0xea   :  { %v157_v54 = vpop.f32.mrb[3].mxu1 }
  0xf5   :  { %v540_v55 = vpop.f32.mrb[0].mxu0 }
  0xf6   :  { %v542_v57 = vadd.f32 %v540_v55, %v516_v51  ;;  %v330_v58 = vpop.f32.mrb[1].mxu0 }
  0xf7   :  { %v543_v59 = vadd.f32 %v330_v58, %v154_v52  ;;  %v541_v60 = vpop.f32.mrb[2].mxu0 }
  0xf8   :  { %v358_v61 = vadd.f32 %v542_v57, %v468_v56  ;;  %v544_v62 = vadd.f32 %v541_v60, %v517_v53  ;;  %v333_v63 = vpop.f32.mrb[3].mxu0 }
  0xf9   :  { %v356_v0 = vadd.f32 %v543_v59, %v468_v56  ;;  %v545_v1 = vadd.f32 %v333_v63, %v157_v54 }
  0xfa   :  { %v362_v2 = vmul.f32 0.01, %v358_v61  ;;  %v359_v3 = vadd.f32 %v544_v62, %v468_v56 }
  0xfb   :  { %v360_v4 = vmul.f32 0.01, %v356_v0  ;;  %v357_v5 = vadd.f32 %v545_v1, %v468_v56 }
  0xfc   :  { %v363_v6 = vmul.f32 0.01, %v359_v3  ;;  %v366_v9 = vmax.f32 %v358_v61, %v362_v2 }
  0xfd   :  { %v364_v7 = vmax.f32 %v356_v0, %v360_v4  ;;  %v361_v8 = vmul.f32 0.01, %v357_v5 }
  0xfe   :  { %v367_v10 = vmax.f32 %v359_v3, %v363_v6  ;;  %v409_v17 = vmul.f32 %v366_v9, %v366_v9 }
  0xff   :  { %v365_v11 = vmax.f32 %v357_v5, %v361_v8  ;;  %v407_v13 = vmul.f32 %v364_v7, %v364_v7 }
 0x100   :  { %v485_v12 = vpack.c.bf16 %v367_v10, %v366_v9  ;;  %v410_v20 = vmul.f32 %v367_v10, %v367_v10 }
 0x101   :  { %v480_v14 = vpack.c.bf16 %v365_v11, %v364_v7  ;;  %v395_v15 = vadd.f32 %v365_v11, %v364_v7  ;;  %v408_v16 = vmul.f32 %v365_v11, %v365_v11 }
 0x102   :  { %487 = vst [vmem:[%s690_s3 + $0x8] sm:$0xff] %v485_v12  }
 0x103   :  { %481 = vst [vmem:[%s690_s3] sm:$0xff] %v480_v14   ;;  %v396_v18 = vadd.f32 %v395_v15, %v366_v9  ;;  %v411_v19 = vadd.f32 %v408_v16, %v407_v13 }
 0x105   :  { %v397_v21 = vadd.f32 %v396_v18, %v367_v10  ;;  %v412_v22 = vadd.f32 %v411_v19, %v409_v17 }
 0x107   :  { %v398_v23 = vrot.slane %v397_v21, 4  ;;  %v413_v24 = vadd.f32 %v412_v22, %v410_v20 }
 0x109   :  { %v399_v25 = vadd.f32 %v398_v23, %v397_v21  ;;  %v414_v26 = vrot.slane %v413_v24, 4 }
 0x10b   :  { %v400_v27 = vrot.slane %v399_v25, 2  ;;  %v415_v28 = vadd.f32 %v414_v26, %v413_v24 }
 0x10d   :  { %v401_v29 = vadd.f32 %v400_v27, %v399_v25  ;;  %v416_v30 = vrot.slane %v415_v28, 2 }
 0x10f   :  { %v402_v31 = vrot.slane %v401_v29, 1  ;;  %v417_v32 = vadd.f32 %v416_v30, %v415_v28 }
 0x111   :  { %v403_v34 = vadd.f32 %v402_v31, %v401_v29  ;;  %v418_v35 = vrot.slane %v417_v32, 1 }
 0x113   :  { %v404_v37 = vadd.f32 %v403_v34, %v394_v33  ;;  %v419_v38 = vadd.f32 %v418_v35, %v417_v32 }
 0x115   :  { %405 = vst [vmem:[%s687_s4] sm:$0x1] %v404_v37  ;;  %v420_v39 = vadd.f32 %v419_v38, %v406_v36 }
 0x117   :  { %421 = vst [vmem:[%s688_s5] sm:$0x1] %v420_v39 }

// kernel: separated_conv2d_block.5
= control target key start
LH: loop header
LB: loop body
LE: loop exit
PB: predicated region body
PF: predicated region fallthrough
CT: control target
= control target key end

     0   :  { %s307_s12 = smov 0   ;;  %s324_s0 = inlined_call_operand.vmem [shape: bf16[32,128], index: 0, kind: input, shape index: {}]   ;;  %s325_s1 = inlined_call_operand.vmem [shape: f32[1,128], index: 1, kind: input, shape index: {}]   ;;  %s326_s2 = inlined_call_operand.vmem [shape: f32[1,128], index: 2, kind: input, shape index: {}]   ;;  %s327_s3 = inlined_call_operand.vmem [shape: f32[32,128], index: 3, kind: output, shape index: {}]  }
   0x1 LB: > { %s254_s13 = sadd.s32 4294967295, %s285_s12   ;;  %p258_p0 = scmp.ge.s32.totalorder %s285_s12, 1  ;;  %s285_s12 = sphi %s307_s12, %s13_s12  }
   0x2   : > { %p138_p1 = scmp.lt.s32.totalorder %s285_s12, 3 }
   0x4   : > { %p139_p2 = pnand %p258_p0, %p138_p1 }
   0x5   : > { %s259_s14 = sshll.u32 (!%p139_p2), %s254_s13, 1  ;;  %v263_v1 = vld [vmem:[%s325_s1] ss:$0 sm:$0xff] (!%p139_p2) }
   0x6   : > { %142 = sbr.rel (%p139_p2) target bundleno = 24 (0x18), region = 32  ;;  %p163_p3 = scmp.lt.s32.totalorder (!%p139_p2), %s259_s14, 3  ;;  %v264_v4 = vld [vmem:[%s326_s2] ss:$0 sm:$0xff] (!%p139_p2) }
   0xd   : > { %s329_s14 = smov (!%p163_p3, %s259_s14), 3 }
   0xe   : > { %s260_s15 = sshll.u32 %s329_s14, 2  ;;  %s262_s21 = sshll.u32 %s329_s14, 3 }
   0xf   : > { %s166_s18 = scalar_lea.vmem %s324_s0, %s260_s15  ;;  %s172_s26 = scalar_lea.vmem %s327_s3, %s262_s21 }
  0x10   : > { %v268_v0 = vld [vmem:[%s166_s18] sm:$0xff]  }
  0x11   : > { %v269_v2 = vunpack.c.l.bf16 %v268_v0  ;;  %v270_v3 = vunpack.c.h.bf16 %v268_v0 }
  0x13   : > { %v185_v5 = vmul.f32 %v269_v2, %v263_v1  ;;  %v186_v6 = vmul.f32 %v270_v3, %v263_v1 }
  0x15   : > { %v194_v7 = vadd.f32 %v264_v4, %v185_v5  ;;  %v195_v8 = vadd.f32 %v264_v4, %v186_v6 }
  0x17   : > { %196 = vst [vmem:[%s172_s26] sm:$0xff] %v194_v7  ;;  %197 = vst [vmem:[%s172_s26 + $0x8] sm:$0xff] %v195_v8 }
  0x18 PF: > { %s13_s12 = sadd.s32 1, %s285_s12  }
  0x19   : > { %p10_p4 = scmp.ge.s32.totalorder %s13_s12, 4  }
  0x1b   :  { %12 = sbr.rel (!%p10_p4) target bundleno = 1 (0x1), region = 62 }

// kernel: separated_conv2d_block.4
= control target key start
LH: loop header
LB: loop body
LE: loop exit
PB: predicated region body
PF: predicated region fallthrough
CT: control target
= control target key end

     0   :  { %s658_s24 = smov 0   ;;  %s737_s0 = inlined_call_operand.vmem [shape: bf16[32,128], index: 0, kind: input, shape index: {}]   ;;  %s738_s1 = inlined_call_operand.vmem [shape: f32[1,128], index: 1, kind: input, shape index: {}]   ;;  %s739_s2 = inlined_call_operand.vmem [shape: f32[1,128], index: 2, kind: input, shape index: {}]   ;;  %s740_s3 = inlined_call_operand.vmem [shape: bf16[128,128], index: 3, kind: input, shape index: {}]   ;;  %s741_s4 = inlined_call_operand.vmem [shape: f32[1,128], index: 4, kind: input, shape index: {}]   ;;  %s742_s5 = inlined_call_operand.vmem [shape: bf16[32,128], index: 5, kind: output, shape index: {0}]   ;;  %s743_s6 = inlined_call_operand.vmem [shape: f32[1,128], index: 6, kind: output, shape index: {1}]   ;;  %s744_s7 = inlined_call_operand.vmem [shape: f32[1,128], index: 7, kind: output, shape index: {2}]  }
   0x1 LB: > { %s523_s25 = sadd.s32 4294967295, %s613_s24   ;;  %p527_p0 = scmp.ge.s32.totalorder %s613_s24, 1  ;;  %s613_s24 = sphi %s658_s24, %s18_s24  }
   0x2   : > { %p233_p1 = scmp.lt.s32.totalorder %s613_s24, 3 }
   0x4   : > { %p234_p2 = pnand %p527_p0, %p233_p1 }
   0x5   : > { %v599_v0 = vld [vmem:[%s740_s3] sm:$0xff] (!%p234_p2)   ;;  %v615_v1 = vmov (!%p234_p2), 0.0   ;;  %v600_v2 = vld [vmem:[%s740_s3 + $0x8] sm:$0xff] (!%p234_p2)   ;;  %vm616_vm0 = vmmov (!%p234_p2), 0   ;;  %s528_s30 = sshll.u32 (!%p234_p2), %s523_s25, 1  ;;  %v601_v3 = vld [vmem:[%s740_s3 + $0x10] sm:$0xff] (!%p234_p2)  }
   0x6   : > { %237 = sbr.rel (%p234_p2) target bundleno = 280 (0x118), region = 40  ;;  %568 = vmatprep.subr.bf16.mxu0 (!%p234_p2), %v615_v1  ;;  %584 = vmatprep.mubr.msk.bf16.mxu0 (!%p234_p2), %vm616_vm0, %v615_v1  ;;  %p266_p3 = scmp.lt.s32.totalorder (!%p234_p2), %s528_s30, 3  ;;  %v602_v4 = vld [vmem:[%s740_s3 + $0x18] sm:$0xff] (!%p234_p2)   ;;  %v603_v5 = vld [vmem:[%s740_s3 + $0x20] sm:$0xff] (!%p234_p2)   ;;  %v604_v9 = vld [vmem:[%s740_s3 + $0x28] sm:$0xff] (!%p234_p2)  }
   0x7   : > { %569 = vmatpush3.bf16.msra.mxu0 (!%p234_p2), %v599_v0  ;;  %v532_v10 = vld [vmem:[%s738_s1] ss:$0 sm:$0xff] (!%p234_p2)  ;;  %v605_v13 = vld [vmem:[%s740_s3 + $0x30] sm:$0xff] (!%p234_p2)   ;;  %v606_v17 = vld [vmem:[%s740_s3 + $0x38] sm:$0xff] (!%p234_p2)   ;;  %p545_p4 = scmp.ne.s32.totalorder (!%p234_p2), %s523_s25, 0 }
   0x8   : > { %570 = vmatprep.subr.bf16.mxu0 (!%p234_p2), %v615_v1  ;;  %v533_v14 = vld [vmem:[%s739_s2] ss:$0 sm:$0xff] (!%p234_p2) }
   0x9   : > { %v534_v19 = vld [vmem:[%s741_s4] ss:$0 sm:$0xff] (!%p234_p2) }
   0xb   : > { %571 = vmatpush3.bf16.msra.mxu0 (!%p234_p2), %v600_v2 }
   0xc   : > { %572 = vmatprep.subr.bf16.mxu0 (!%p234_p2), %v615_v1 }
   0xd   : > { %s746_s30 = smov (!%p266_p3, %s528_s30), 3  ;;  %v617_v31 = vmov (!%p545_p4), 0.0  }
   0xe   : > { %s529_s10 = sshll.u32 %s746_s30, 2  ;;  %431 = vst [vmem:[%s743_s6] sm:$0x1] (!%p545_p4), %v617_v31  ;;  %432 = vst [vmem:[%s744_s7] sm:$0x1] (!%p545_p4), %v617_v31 }
   0xf   : > { %573 = vmatpush3.bf16.msra.mxu0 %v601_v3  ;;  %s269_s15 = scalar_lea.vmem %s737_s0, %s529_s10  ;;  %s275_s13 = scalar_lea.vmem %s742_s5, %s529_s10 }
  0x10   : > { %574 = vmatprep.subr.bf16.mxu0 %v615_v1  ;;  %v551_v6 = vld [vmem:[%s269_s15] sm:$0xff]  }
  0x11   : > { %v552_v7 = vunpack.c.l.bf16 %v551_v6  ;;  %v553_v8 = vunpack.c.h.bf16 %v551_v6 }
  0x13   : > { %575 = vmatpush3.bf16.msra.mxu0 %v602_v4  ;;  %v289_v11 = vmul.f32 %v552_v7, %v532_v10  ;;  %v290_v12 = vmul.f32 %v553_v8, %v532_v10 }
  0x14   : > { %576 = vmatprep.subr.bf16.mxu0 %v615_v1 }
  0x15   : > { %v298_v15 = vadd.f32 %v533_v14, %v289_v11  ;;  %v299_v16 = vadd.f32 %v533_v14, %v290_v12 }
  0x17   : > { %577 = vmatpush3.bf16.msra.mxu0 %v603_v5  ;;  %v300_v18 = vpack.c.bf16 %v299_v16, %v298_v15 }
  0x18   : > { %578 = vmatprep.subr.bf16.mxu0 %v615_v1 }
  0x1b   : > { %579 = vmatpush3.bf16.msra.mxu0 %v604_v9 }
  0x1c   : > { %580 = vmatprep.subr.bf16.mxu0 %v615_v1 }
  0x1f   : > { %581 = vmatpush3.bf16.msra.mxu0 %v605_v13 }
  0x20   : > { %582 = vmatprep.subr.bf16.mxu0 %v615_v1 }
  0x23   : > { %583 = vmatpush3.bf16.msra.mxu0 %v606_v17 }
  0x26   : > { %585 = vmatmul.mubr.bf16.vlgmr.msra.gmra.mrb[0].mxu0 %v300_v18 }
  0xf9   : > { %v406_v20 = vpop.f32.mrb[0].mxu0 }
  0xfa   : > { %v407_v21 = vadd.f32 %v534_v19, %v406_v20  ;;  %v586_v22 = vpop.f32.mrb[1].mxu0 }
  0xfb   : > { %v409_v23 = vpop.f32.mrb[2].mxu0 }
  0xfc   : > { %v413_v24 = vmul.f32 0.01, %v407_v21  ;;  %v410_v25 = vadd.f32 %v534_v19, %v409_v23  ;;  %v587_v26 = vpop.f32.mrb[3].mxu0 }
  0xfe   : > { %v414_v27 = vmul.f32 0.01, %v410_v25  ;;  %v415_v28 = vmax.f32 %v407_v21, %v413_v24  ;;  %430 = sbr.rel (%p545_p4) target bundleno = 261 (0x105), region = 44 }
 0x100   : > { %v416_v29 = vmax.f32 %v410_v25, %v414_v27 }
 0x102   : > { %v557_v30 = vpack.c.bf16 %v416_v29, %v415_v28 }
 0x104   : > { %558 = vst [vmem:[%s275_s13] sm:$0xff] %v557_v30  }
 0x105 PF: > { %v434_v32 = vadd.f32 %v416_v29, %v415_v28  ;;  %v444_v33 = vmul.f32 %v415_v28, %v415_v28  ;;  %v445_v34 = vmul.f32 %v416_v29, %v416_v29  ;;  %v433_v45 = vld [vmem:[%s743_s6] sm:$0x1] }
 0x106   : > { %v443_v48 = vld [vmem:[%s744_s7] sm:$0x1] }
 0x107   : > { %v435_v35 = vrot.slane %v434_v32, 4  ;;  %v446_v36 = vadd.f32 %v445_v34, %v444_v33 }
 0x109   : > { %v436_v37 = vadd.f32 %v435_v35, %v434_v32  ;;  %v447_v38 = vrot.slane %v446_v36, 4 }
 0x10b   : > { %v437_v39 = vrot.slane %v436_v37, 2  ;;  %v448_v40 = vadd.f32 %v447_v38, %v446_v36 }
 0x10d   : > { %v438_v41 = vadd.f32 %v437_v39, %v436_v37  ;;  %v449_v42 = vrot.slane %v448_v40, 2 }
 0x10f   : > { %v439_v43 = vrot.slane %v438_v41, 1  ;;  %v450_v44 = vadd.f32 %v449_v42, %v448_v40 }
 0x111   : > { %v440_v46 = vadd.f32 %v439_v43, %v438_v41  ;;  %v451_v47 = vrot.slane %v450_v44, 1 }
 0x113   : > { %v441_v49 = vadd.f32 %v440_v46, %v433_v45  ;;  %v452_v50 = vadd.f32 %v451_v47, %v450_v44 }
 0x115   : > { %442 = vst [vmem:[%s743_s6] sm:$0x1] %v441_v49  ;;  %v453_v51 = vadd.f32 %v452_v50, %v443_v48 }
 0x117   : > { %454 = vst [vmem:[%s744_s7] sm:$0x1] %v453_v51 }
 0x118 PF: > { %s18_s24 = sadd.s32 1, %s613_s24  }
 0x119   : > { %p15_p5 = scmp.ge.s32.totalorder %s18_s24, 4  }
 0x11b   :  { %17 = sbr.rel (!%p15_p5) target bundleno = 1 (0x1), region = 90 }

</bundles_post_ra>
